<compile_context>
chip_gen: v7x
topology: tpu7x:2x2x1
jax: 0.10.0
libtpu: 0.0.40
codegen_flags: <defaults>
</compile_context>

<pallas_src>
import functools
import math

import numpy as np
import jax
import jax.numpy as jnp
from jax.experimental import pallas as pl
from jax.experimental.pallas import tpu as pltpu


def _pe_dropout_kernel(seed_ref, x_ref, cols_ref, o_ref, *, p, apply_dropout):
    tile_r, slab_c = x_ref.shape

    rrate = cols_ref[0:1, :]    # (1, C)  = r * div_term[col // 2]  (slope per slab row)
    phase0 = cols_ref[1:2, :]   # (1, C)  = (sub-row within slab row) * div_term[col // 2]
    parity = cols_ref[2:3, :]   # (1, C)  = col % 2  (0 -> sin, 1 -> cos)

    row0 = pl.program_id(0) * tile_r
    row_idx = jax.lax.broadcasted_iota(jnp.int32, (tile_r, slab_c), 0) + row0
    ang = row_idx.astype(jnp.float32) * rrate + phase0
    pe = jnp.where(parity > 0.5, jnp.cos(ang), jnp.sin(ang))

    y = x_ref[...].astype(jnp.float32) + pe

    if apply_dropout and p > 0.0:
        # Stateless per-element Bernoulli mask: hash(flat_index, seed).
        col_idx = jax.lax.broadcasted_iota(jnp.int32, (tile_r, slab_c), 1)
        u = row_idx.astype(jnp.uint32) * jnp.uint32(slab_c) + col_idx.astype(jnp.uint32)
        u = u + seed_ref[0].astype(jnp.uint32) * jnp.uint32(0x9E3779B9)
        u = u ^ (u >> 16)
        u = u * jnp.uint32(0x7FEB352D)
        u = u ^ (u >> 15)
        u = u * jnp.uint32(0x846CA68B)
        u = u ^ (u >> 16)
        thresh = jnp.uint32(min(int(round(p * 2.0 ** 32)), 2 ** 32 - 1))
        keep = u >= thresh                       # P(keep) = 1 - p
        y = jnp.where(keep, y * jnp.float32(1.0 / (1.0 - p)), jnp.float32(0.0))

    o_ref[...] = y.astype(o_ref.dtype)


def make_pe_table(d_model: int, max_len: int = 5000) -> jnp.ndarray:
    """Reference PE table, same construction as the torch __init__ (float32)."""
    position = jnp.arange(max_len, dtype=jnp.float32)[:, None]
    div_term = jnp.exp(
        jnp.arange(0, d_model, 2, dtype=jnp.float32) * (-math.log(10000.0) / d_model)
    )
    pe = jnp.zeros((max_len, d_model), dtype=jnp.float32)
    pe = pe.at[:, 0::2].set(jnp.sin(position * div_term))
    pe = pe.at[:, 1::2].set(jnp.cos(position * div_term))
    return pe


def _pick_tile_rows(R: int, C: int, itemsize: int, target_bytes: int = 2 << 20) -> int:
    """Largest row tile (divisor of R) keeping a tile around ~2 MiB."""
    limit = max(1, target_bytes // (C * itemsize))
    if R <= limit:
        return R
    best8 = 0
    for d in range(8, min(R, limit) + 1, 8):
        if R % d == 0:
            best8 = d
    if best8:
        return best8
    for d in range(8, R + 1, 8):      # no aligned divisor under the size limit
        if R % d == 0:
            return d
    return R                          # last resort: single (lane-dense) block


def positional_encoding(x, *, p=0.1, seed=0, training=True, max_len=5000):
    """x: (seq_len, d_model).  Matches torch `dropout(x + pe[:seq_len])`."""
    S, D = x.shape
    assert 0.0 <= p < 1.0, "dropout p must be in [0, 1)"
    assert S <= max_len

    # --- lane-dense slab: (S, D) -> (R, C) with C % 128 == 0 when possible ---
    r = 1
    for cand in range(1, S + 1):
        if S % cand == 0 and (cand * D) % 128 == 0:
            r = cand
            break
    C = r * D
    R = S // r
    x_slab = x.reshape(R, C)

    # --- per-column PE metadata (tiny, read once; PE rows recomputed in-kernel) ---
    cols = np.arange(C)
    brow = (cols // D).astype(np.float32)          # sub-row inside a slab row
    col = cols % D                                 # original model dim
    div_term = np.exp(
        np.arange(0, D, 2, dtype=np.float32) * np.float32(-math.log(10000.0) / D)
    )
    rate = div_term[col // 2].astype(np.float32)
    pe_cols = jnp.asarray(
        np.stack(
            [(r * rate).astype(np.float32),        # angle slope per slab row
             (brow * rate).astype(np.float32),     # angle offset within slab row
             (col % 2).astype(np.float32)],        # parity: 0 -> sin, 1 -> cos
            axis=0,
        )
    )                                              # (3, C) float32

    tile_r = _pick_tile_rows(R, C, x.dtype.itemsize)
    seed_arr = jnp.array([seed], dtype=jnp.int32)

    kernel = functools.partial(
        _pe_dropout_kernel, p=float(p), apply_dropout=bool(training)
    )
    grid_spec = pltpu.PrefetchScalarGridSpec(
        num_scalar_prefetch=1,
        grid=(R // tile_r,),
        in_specs=[
            pl.BlockSpec((tile_r, C), lambda i, seed: (i, 0)),  # x slab tile
            pl.BlockSpec((3, C), lambda i, seed: (0, 0)),       # PE column metadata
        ],
        out_specs=pl.BlockSpec((tile_r, C), lambda i, seed: (i, 0)),
    )
    out = pl.pallas_call(
        kernel,
        out_shape=jax.ShapeDtypeStruct((R, C), x.dtype),
        grid_spec=grid_spec,
        compiler_params=pltpu.CompilerParams(
            dimension_semantics=("parallel",),     # tiles are independent
        ),
    )(seed_arr, x_slab, pe_cols)
    return out.reshape(S, D)


if __name__ == "__main__":
    # Small shapes consistent with the module: seq_len=8, d_model=32.
    SEQ, D_MODEL, MAX_LEN, P = 8, 32, 5000, 0.1

    key = jax.random.PRNGKey(0)
    x = jax.random.normal(key, (SEQ, D_MODEL), dtype=jnp.float32)

    pe_ref = make_pe_table(D_MODEL, MAX_LEN)
    ref = x + pe_ref[:SEQ]

    # Eval-mode path (dropout = identity): must match x + pe[:seq_len].
    y_eval = positional_encoding(x, p=P, training=False, max_len=MAX_LEN)
    y_eval = jax.block_until_ready(y_eval)
    assert jnp.allclose(y_eval, ref, atol=1e-5), "eval-mode mismatch"

    # Training-mode path: surviving elements equal ref / (1 - p); dropped are 0.
    y_train = positional_encoding(x, p=P, seed=123, training=True, max_len=MAX_LEN)
    y_train = jax.block_until_ready(y_train)
    scaled = ref / (1.0 - P)
    ok = jnp.all(jnp.isclose(y_train, scaled, atol=1e-4) | (y_train == 0.0))
    assert bool(ok), "training-mode dropout semantics mismatch"

    # Secondary eval check at a different (still small) shape / reshape factor.
    S2, D2 = 64, 64
    x2 = jax.random.normal(jax.random.PRNGKey(1), (S2, D2), dtype=jnp.float32)
    ref2 = x2 + make_pe_table(D2, MAX_LEN)[:S2]
    y2 = jax.block_until_ready(
        positional_encoding(x2, p=P, training=False, max_len=MAX_LEN)
    )
    assert jnp.allclose(y2, ref2, atol=1e-5), "eval-mode mismatch (64x64)"

    print("KERNEL_OK")
</pallas_src>

<mosaic_0001>
module attributes {stable_mosaic.version = 11 : i64} {
  func.func @_pe_dropout_kernel(%arg0: i32, %arg1: memref<1xi32, #tpu.memory_space<smem>>, %arg2: memref<2x128xf32, #tpu.memory_space<vmem>>, %arg3: memref<3x128xf32, #tpu.memory_space<vmem>>, %arg4: memref<2x128xf32, #tpu.memory_space<vmem>>) attributes {dimension_semantics = [#tpu.dimension_semantics<parallel>], iteration_bounds = array<i64: 1>, scalar_prefetch = 1 : i64, scratch_operands = 0 : i64, tpu.core_type = #tpu.core_type<tc>, window_params = [{transform_indices = @transform_0, window_bounds = array<i64: 2, 128>}, {pipeline_mode = #tpu.pipeline_mode<synchronous>, transform_indices = @transform_1, window_bounds = array<i64: 3, 128>}, {transform_indices = @transform_2, window_bounds = array<i64: 2, 128>}]} {
    %c0 = arith.constant 0 : index
    %c0_0 = arith.constant 0 : index
    %0 = vector.load %arg3[%c0, %c0_0] : memref<3x128xf32, #tpu.memory_space<vmem>>, vector<1x128xf32>
    %c1 = arith.constant 1 : index
    %c0_1 = arith.constant 0 : index
    %1 = vector.load %arg3[%c1, %c0_1] : memref<3x128xf32, #tpu.memory_space<vmem>>, vector<1x128xf32>
    %c2 = arith.constant 2 : index
    %c0_2 = arith.constant 0 : index
    %2 = vector.load %arg3[%c2, %c0_2] : memref<3x128xf32, #tpu.memory_space<vmem>>, vector<1x128xf32>
    %c2_i32 = arith.constant 2 : i32
    %3 = arith.muli %arg0, %c2_i32 : i32
    %4 = tpu.iota {dimensions = array<i32: 0>} : vector<2x128xi32>
    %5 = vector.broadcast %3 : i32 to vector<2x128xi32>
    %6 = arith.addi %4, %5 : vector<2x128xi32>
    %7 = arith.sitofp %6 : vector<2x128xi32> to vector<2x128xf32>
    %8 = vector.broadcast %0 : vector<1x128xf32> to vector<2x128xf32>
    %9 = arith.mulf %7, %8 : vector<2x128xf32>
    %10 = vector.broadcast %1 : vector<1x128xf32> to vector<2x128xf32>
    %11 = arith.addf %9, %10 : vector<2x128xf32>
    %cst = arith.constant 5.000000e-01 : f32
    %12 = vector.broadcast %cst : f32 to vector<1x128xf32>
    %13 = arith.cmpf ogt, %2, %12 : vector<1x128xf32>
    %14 = math.cos %11 : vector<2x128xf32>
    %15 = math.sin %11 : vector<2x128xf32>
    %16 = vector.shape_cast %13 : vector<1x128xi1> to vector<1x128xi1>
    %17 = vector.broadcast %16 : vector<1x128xi1> to vector<2x128xi1>
    %18 = arith.select %17, %14, %15 : vector<2x128xi1>, vector<2x128xf32>
    %c0_3 = arith.constant 0 : index
    %c0_4 = arith.constant 0 : index
    %19 = vector.load %arg2[%c0_3, %c0_4] : memref<2x128xf32, #tpu.memory_space<vmem>>, vector<2x128xf32>
    %20 = arith.addf %19, %18 : vector<2x128xf32>
    %c0_5 = arith.constant 0 : index
    %c0_6 = arith.constant 0 : index
    %21 = vector.load %arg4[%c0_5, %c0_6] : memref<2x128xf32, #tpu.memory_space<vmem>>, vector<2x128xf32>
    tpu.vector_store %arg4[%c0_5, %c0_6], %20 {strides = array<i32>} : memref<2x128xf32, #tpu.memory_space<vmem>>, vector<2x128xf32>,
    return
  }
  func.func @transform_0(%arg0: i32, %arg1: memref<1xi32, #tpu.memory_space<smem>>) -> (i32, i32) {
    %c0_i32 = arith.constant 0 : i32
    %c0_i32_0 = arith.constant 0 : i32
    return %arg0, %c0_i32 : i32, i32
  }
  func.func @transform_1(%arg0: i32, %arg1: memref<1xi32, #tpu.memory_space<smem>>) -> (i32, i32) {
    %c0_i32 = arith.constant 0 : i32
    %c0_i32_0 = arith.constant 0 : i32
    %c0_i32_1 = arith.constant 0 : i32
    return %c0_i32, %c0_i32_0 : i32, i32
  }
  func.func @transform_2(%arg0: i32, %arg1: memref<1xi32, #tpu.memory_space<smem>>) -> (i32, i32) {
    %c0_i32 = arith.constant 0 : i32
    %c0_i32_0 = arith.constant 0 : i32
    return %arg0, %c0_i32 : i32, i32
  }
}

</mosaic_0001>

<bundles_post_ra>
// kernel: tpu_custom_call.1
= control target key start
LH: loop header
LB: loop body
LE: loop exit
PB: predicated region body
PF: predicated region fallthrough
CT: control target
= control target key end

     0   :  { %9 = vsyncpa [#allocation5], 0  ;;  %v18_v0 = vlaneseq  ;;  %v315_v18 = vmov 683565275   ;;  %v316_v20 = vmov 2475754826   ;;  %s392_s0 = inlined_call_operand.<no memory space> [shape: s32[1], index: 0, kind: input, shape index: {}]   ;;  %s393_s1 = inlined_call_operand.vmem [shape: f32[2,128], index: 1, kind: input, shape index: {}]   ;;  %s394_s2 = inlined_call_operand.vmem [shape: f32[3,128], index: 2, kind: input, shape index: {}]   ;;  %s395_s3 = inlined_call_operand.hbm [shape: f32[2,128], index: 3, kind: output, shape index: {}]  }
   0x1   :  { %v265_v2 = vld [vmem:[%s394_s2] ss:$0 sm:$0xff]  ;;  %v266_v4 = vld [vmem:[%s394_s2 + $0x1] ss:$0 sm:$0xff]  ;;  %v317_v22 = vmov 2131351028  }
   0x2   :  { %v343_v1 = vshrl.u32 %v18_v0, 7  ;;  %v318_v24 = vmov 2102212464   ;;  %v319_v26 = vmov 920167782   ;;  %s322_s18 = smov [#allocation4]  }
   0x3   :  { %v320_v33 = vmov 1326507024   ;;  %s257_s19 = sshll.u32 %s322_s18, 4  ;;  %s258_s19 = int_to_ptr.vmem [resolvable:$true] %s257_s19 }
   0x4   :  { %v22_v3 = vcvt.s32.f32 %v343_v1  ;;  %s291_s20 = scalar_lea.vmem %s258_s19, 32  ;;  %p296_p1 = scmp.lt.s32.totalorder %s258_s19, %s258_s19 }
   0x5   :  { %p292_p0 = scmp.ne.s32.totalorder %s258_s19, %s291_s20  ;;  %p297_p2 = scmp.lt.s32.totalorder %s291_s20, %s291_s20 }
   0x6   :  { %v27_v5 = vmul.f32 %v265_v2, %v22_v3 }
   0x7   :  { %p298_p3 = por %p297_p2, %p296_p1 }
   0x8   :  { %v352_v6 = vadd.f32 %v266_v4, %v27_v5 }
   0x9   :  { %p299_p4 = pnand %p298_p3, %p292_p0 }
   0xa   :  { %v37_v7 = vand.u32 2139095040, %v352_v6  ;;  %v34_v9 = vand.u32 2147483647, %v352_v6  ;;  %vm36_vm7 = vcmp.lt.s32.totalorder %v352_v6, 0 }
   0xc   :  { %v38_v8 = vshrl.u32 %v37_v7, 23  ;;  %v41_v12 = vand.u32 8388607, %v34_v9  ;;  %vm35_vm8 = vcmp.le.f32.partialorder %v34_v9, 0.7853982 }
   0xe   :  { %v267_v10 = vadd.s32 4294967169, %v38_v8  ;;  %v42_v15 = vor.u32 8388608, %v41_v12 }
  0x10   :  { %v44_v11 = vadd.s32 1, %v267_v10  ;;  %v82_v35 = vshll.u32 %v42_v15, 8 }
  0x12   :  { %vm45_vm0 = vcmp.gt.s32.totalorder %v44_v11, 0 }
  0x13   :  { %v46_v13 = vsel %vm45_vm0, %v44_v11, 0  ;;  %vm126_vm0 = vweird.f32 %v352_v6 }
  0x14   :  { %v48_v14 = vand.u32 31, %v46_v13  ;;  %v47_v16 = vshrl.u32 %v46_v13, 5 }
  0x16   :  { %v49_v17 = vsub.s32 32, %v48_v14  ;;  %v51_v19 = vshll.u32 %v315_v18, %v48_v14  ;;  %v54_v21 = vshll.u32 %v316_v20, %v48_v14  ;;  %v57_v23 = vshll.u32 %v317_v22, %v48_v14 }
  0x17   :  { %v60_v25 = vshll.u32 %v318_v24, %v48_v14  ;;  %v63_v27 = vshll.u32 %v319_v26, %v48_v14  ;;  %vm66_vm1 = vcmp.lt.s32.totalorder %v47_v16, 1  ;;  %vm69_vm2 = vcmp.lt.s32.totalorder %v47_v16, 4 }
  0x18   :  { %v50_v28 = vshrl.u32 %v315_v18, %v49_v17  ;;  %v52_v29 = vshrl.u32 %v316_v20, %v49_v17  ;;  %v55_v30 = vshrl.u32 %v317_v22, %v49_v17  ;;  %v58_v31 = vshrl.u32 %v318_v24, %v49_v17 }
  0x19   :  { %v61_v32 = vshrl.u32 %v319_v26, %v49_v17  ;;  %v64_v34 = vshrl.u32 %v320_v33, %v49_v17  ;;  %vm67_vm3 = vcmp.lt.s32.totalorder %v47_v16, 2  ;;  %vm68_vm4 = vcmp.lt.s32.totalorder %v47_v16, 3 }
  0x1a   :  { %v53_v36 = vor.u32 %v52_v29, %v51_v19  ;;  %v56_v37 = vor.u32 %v55_v30, %v54_v21  ;;  %v59_v38 = vor.u32 %v58_v31, %v57_v23  ;;  %v244_v31 = vsub.s32 0, %v343_v1 }
  0x1b   :  { %v62_v39 = vor.u32 %v61_v32, %v60_v25  ;;  %v65_v40 = vor.u32 %v64_v34, %v63_v27  ;;  %v16_v27 = vld [vmem:[%s394_s2 + $0x2] sm:$0x1]  ;;  %v321_v32 = vmov 0  }
  0x1c   :  { %v70_v41 = vsel %vm66_vm1, %v50_v28, %v53_v36  ;;  %v71_v42 = vsel %vm69_vm2, %v59_v38, 2102212464  ;;  %v74_v43 = vsel %vm66_vm1, %v53_v36, %v56_v37  ;;  %v78_v44 = vsel %vm66_vm1, %v56_v37, %v59_v38 }
  0x1d   :  { %v72_v45 = vsel %vm68_vm4, %v56_v37, %v71_v42  ;;  %v75_v46 = vsel %vm69_vm2, %v62_v39, 920167782  ;;  %v79_v47 = vsel %vm69_vm2, %v65_v40, 1326507024  ;;  %vm33_vm9 = vcmp.gt.f32.partialorder %v16_v27, 0.5 }
  0x1e   :  { %v76_v48 = vsel %vm68_vm4, %v59_v38, %v75_v46  ;;  %v80_v49 = vsel %vm68_vm4, %v62_v39, %v79_v47  ;;  %v73_v50 = vsel %vm67_vm3, %v70_v41, %v72_v45  ;;  %v241_v9 = vsel %vm33_vm9, 1, %v321_v32 }
  0x1f   :  { %v77_v51 = vsel %vm67_vm3, %v74_v43, %v76_v48  ;;  %v81_v52 = vsel %vm67_vm3, %v78_v44, %v80_v49  ;;  %v89_v57 = vmul.u32 %v82_v35, %v73_v50  ;;  %v245_v34 = vrot.slane %v241_v9, %v244_v31  ;;  %v248_v43 = vld [vmem:[%s393_s1] sm:$0x3] }
  0x20   :  { %v358_v53 = vmul.u32.u64.low %v82_v35, %v81_v52  ;;  %v359_v54 = vmul.u32.u64.high %v82_v35, %v81_v52, %v358_v53  ;;  %v361_v55 = vmul.u32.u64.low %v82_v35, %v77_v51  ;;  %v362_v56 = vmul.u32.u64.high %v82_v35, %v77_v51, %v361_v55 }
  0x21   :  { %vm246_vm1 = vcmp.eq.s32.totalorder %v245_v34, 1 }
  0x22   :  { %vm91_vm5 = vc.u32 %v359_v54, %v361_v55  ;;  %v92_v58 = vadd.s32 1, %v362_v56  ;;  %v90_v7 = vadd.s32 %v361_v55, %v359_v54 }
  0x24   :  { %v93_v59 = vsel %vm91_vm5, %v92_v58, %v362_v56 }
  0x25   :  { %v94_v60 = vadd.s32 %v93_v59, %v89_v57 }
  0x27   :  { %v95_v61 = vadd.s32 536870912, %v94_v60 }
  0x29   :  { %v96_v62 = vshrl.u32 %v95_v61, 30 }
  0x2b   :  { %v97_v63 = vshll.u32 %v96_v62, 30  ;;  %v120_v20 = vsub.s32 4, %v96_v62 }
  0x2d   :  { %v98_v0 = vsub.s32 %v94_v60, %v97_v63  ;;  %v121_v23 = vsel %vm36_vm7, %v120_v20, %v96_v62 }
  0x2e   :  { %v123_v26 = vsel %vm35_vm8, 0, %v121_v23 }
  0x2f   :  { %v100_v2 = vsub.s32 0, %v98_v0  ;;  %v230_v28 = vadd.s32 3, %v123_v26  ;;  %v127_v29 = vand.u32 3, %v123_v26 }
  0x31   :  { %v268_v3 = vmin.u32 %v100_v2, %v98_v0  ;;  %v231_v30 = vand.u32 3, %v230_v28  ;;  %vm132_vm10 = vcmp.eq.s32.totalorder %v127_v29, 2  ;;  %vm129_vm12 = vcmp.eq.s32.totalorder %v127_v29, 0 }
  0x32   :  { %vm128_vm14 = vcmp.lt.s32.totalorder %v127_v29, 2 }
  0x33   :  { %v102_v4 = vclz %v268_v3  ;;  %vm236_vm11 = vcmp.eq.s32.totalorder %v231_v30, 2  ;;  %vm233_vm13 = vcmp.eq.s32.totalorder %v231_v30, 0  ;;  %vm232_vm15 = vcmp.lt.s32.totalorder %v231_v30, 2 }
  0x35   :  { %v269_v5 = vadd.s32 4294967294, %v102_v4 }
  0x37   :  { %vm270_vm6 = vcmp.lt.s32.totalorder %v269_v5, 0 }
  0x38   :  { %v105_v8 = vsel %vm270_vm6, 0, %v269_v5 }
  0x39   :  { %v106_v10 = vsub.s32 32, %v105_v8  ;;  %v107_v11 = vshll.u32 %v98_v0, %v105_v8  ;;  %v110_v12 = vsub.s32 4294967266, %v105_v8 }
  0x3b   :  { %v108_v13 = vshrl.u32 %v90_v7, %v106_v10  ;;  %v111_v14 = vadd.s32 127, %v110_v12 }
  0x3d   :  { %v109_v15 = vor.u32 %v108_v13, %v107_v11  ;;  %v112_v16 = vshll.u32 %v111_v14, 23 }
  0x3f   :  { %v113_v17 = vor.u32 4788187, %v112_v16  ;;  %v116_v18 = vcvt.s32.f32 %v109_v15 }
  0x41   :  { %v114_v19 = vand.u32 2147483647, %v113_v17 }
  0x43   :  { %v117_v21 = vmul.f32 %v116_v18, %v114_v19 }
  0x45   :  { %v118_v22 = vxor.u32 2147483648, %v117_v21 }
  0x47   :  { %v119_v24 = vsel %vm36_vm7, %v118_v22, %v117_v21 }
  0x48   :  { %v122_v25 = vsel %vm35_vm8, %v352_v6, %v119_v24 }
  0x49   :  { %287 = vcosq.f32 %v122_v25 }
  0x4a   :  { %289 = vsinq.f32 %v122_v25 }
  0x53   :  { %v288_v33 = vpop.eup %287 }
  0x54   :  { %v290_v35 = vpop.eup %289  ;;  %v133_v36 = vxor.u32 2147483648, %v288_v33 }
  0x55   :  { %v130_v37 = vxor.u32 2147483648, %v290_v35 }
  0x56   :  { %v134_v38 = vsel %vm132_vm10, %v133_v36, %v290_v35  ;;  %v238_v39 = vsel %vm236_vm11, %v133_v36, %v290_v35 }
  0x57   :  { %v131_v40 = vsel %vm129_vm12, %v288_v33, %v130_v37  ;;  %v235_v41 = vsel %vm233_vm13, %v288_v33, %v130_v37 }
  0x58   :  { %v135_v1 = vsel %vm128_vm14, %v131_v40, %v134_v38  ;;  %v239_v42 = vsel %vm232_vm15, %v235_v41, %v238_v39 }
  0x59   :  { %v136_v44 = vsel %vm126_vm0, nan, %v135_v1  ;;  %v240_v45 = vsel %vm126_vm0, nan, %v239_v42 }
  0x5a   :  { %v247_v46 = vsel %vm246_vm1, %v136_v44, %v240_v45 }
  0x5b   :  { %v249_v47 = vadd.f32 %v248_v43, %v247_v46 }
  0x5d   :  { %250 = vst [vmem:[#allocation4] sm:$0x3] %v249_v47 }
  0x5e   :  { %302 = shalt.err (!%p299_p4)
}
  0x5f   :  { %s303_s23 = scalar_lea.hbm %s395_s3, 32 }
  0x60   :  { %p304_p5 = scmp.ne.s32.totalorder %s395_s3, %s303_s23  ;;  %p307_p6 = scmp.lt.u32.totalorder %s303_s23, %s395_s3 }
  0x62   :  { %p309_p7 = pnand %p307_p6, %p304_p5 }
  0x64   :  { %312 = shalt.err (!%p309_p7)
}
  0x65   :  { %260 = dma.vmem_to_hbm [thread:$0]  %s258_s19, 32, %s395_s3, [#allocation5]  }
  0x66   :  { %313 = dma.done.wait [#allocation5], 32  }
  0x67   :  { %314 = vsyncadd [#allocation5], 4294967264 }
  0x68   :  { %264 = vsyncpa [#allocation5], 1 }

</bundles_post_ra>
